<compile_context>
chip_gen: v6e
topology: v6e:2x2x1
jax: 0.10.0
libtpu: 0.0.40
codegen_flags: <defaults>
</compile_context>

<pallas_src>
import functools
import math

import numpy as np

import jax
import jax.numpy as jnp
from jax.experimental import pallas as pl
from jax.experimental.pallas import tpu as pltpu


def _sdpa_kernel(q_ref, k_ref, v_ref, bias_ref, ctx_ref, attn_ref, *,
                 scale, compute_dtype, flatten_ctx):
    """One (bh_tile, q_tile) block of heads/queries against all keys.

    q_ref    : (bh, Tq, D)
    k_ref    : (bh, S,  D)
    v_ref    : (bh, S,  D)
    bias_ref : (bh, 1,  S)   f32 additive key-pad bias (0 or -1e9)
    ctx_ref  : (bh, Tq*D) if flatten_ctx else (bh, Tq, D)
    attn_ref : (bh, Tq, S)
    """
    # Pre-scale Q (O(Tq*D) mults instead of O(Tq*S)); bf16 operands for the
    # MXU fast path, f32 accumulation.
    q = (q_ref[...] * scale).astype(compute_dtype)
    k = k_ref[...].astype(compute_dtype)

    # scores = (Q / sqrt(d_k)) @ K^T, contracting on D directly (no k.T).
    scores = jnp.einsum("bqd,bkd->bqk", q, k,
                        preferred_element_type=jnp.float32)     # (bh, Tq, S)

    # masked_fill_(attn_pad, -1e9) as a single VALU add: per-key bias of
    # 0 / -1e9 broadcast over query rows.  (A fully padded key row degrades to
    # a uniform 1/S distribution — same as torch masked_fill + softmax.)
    scores = scores + bias_ref[...]

    # Numerically stable softmax over keys (f32); EUP approx reciprocal for the
    # denominator.  Note: approx reciprocal + bf16 probs => rows do not sum to
    # exactly 1; fine under the stated tolerances.
    m = jnp.max(scores, axis=-1, keepdims=True)
    e = jnp.exp(scores - m)
    denom = jnp.sum(e, axis=-1, keepdims=True)
    attn = e * pl.reciprocal(denom, approx=True)

    # Single narrow cast, reused for the probs store and the attn@V operand.
    attn_c = attn.astype(compute_dtype)
    if jnp.dtype(attn_ref.dtype) == jnp.dtype(compute_dtype):
        attn_ref[...] = attn_c
    else:
        attn_ref[...] = attn.astype(attn_ref.dtype)

    # context = attn @ V (bf16 operands, f32 accumulation).
    ctx = jnp.einsum("bqk,bkd->bqd", attn_c,
                     v_ref[...].astype(compute_dtype),
                     preferred_element_type=jnp.float32)        # (bh, Tq, D)
    ctx = ctx.astype(ctx_ref.dtype)
    if flatten_ctx:
        bh, tq, d = ctx.shape
        ctx_ref[...] = ctx.reshape(bh, tq * d)   # lane-dense (Tq*D)-wide store
    else:
        ctx_ref[...] = ctx


def _round_up(x, m):
    return -(-x // m) * m


def _vmem_limit_bytes():
    """Per-generation scoped-VMEM limit.

    v5e/v6e: 128 MiB physical -> ~96 MiB usable; v7x: 64 MiB -> ~44 MiB.
    Falls back to a value that is safe on every generation if the hardware
    query is unavailable.
    """
    cap = None
    try:
        cap = int(getattr(pltpu.get_tpu_info(), "vmem_capacity_bytes", 0)) or None
    except Exception:
        cap = None
    if cap is None:
        return 40 * 1024 * 1024                       # safe everywhere (v7x incl.)
    if cap >= 100 * 1024 * 1024:                      # v5e / v6e (128 MiB)
        return 96 * 1024 * 1024
    return max(min(cap - 20 * 1024 * 1024, 44 * 1024 * 1024),  # v7x (64 MiB)
               16 * 1024 * 1024)


def _choose_tiles(BH, S, D, in_itemsize, probs_itemsize, vmem_budget):
    """Pick (bh_tile, q_tile, flatten_ctx) so double-buffered pipeline blocks
    plus f32/bf16 softmax temporaries stay under `vmem_budget`.

    Prefers the largest q_tile first, then the largest bh_tile that fits (i.e.
    under VMEM pressure we shrink bh_tile before q_tile, per v7x guidance)."""
    q_cands = sorted({t for t in (1024, 512, 256, 128, 64, 32, 16, 8)
                      if t <= S and S % t == 0} | {S}, reverse=True)
    bh_cands = sorted({b for b in (32, 16, 8, 4, 2, 1) if BH % b == 0}
                      | ({BH} if BH <= 32 else set()), reverse=True)

    def blk(rows, cols, itemsize, bh):
        # VMEM bytes of one (bh, rows, cols) block incl. sublane/lane padding.
        return bh * _round_up(rows, 8) * _round_up(cols, 128) * itemsize

    def footprint(bh, tq):
        blocks = 2 * (                                   # x2: double-buffered
            blk(tq, D, in_itemsize, bh)                  # Q in
            + 2 * blk(S, D, in_itemsize, bh)             # K, V in
            + blk(1, S, 4, bh)                           # bias (f32)
            + blk(tq, D, in_itemsize, bh)                # ctx out
            + blk(tq, S, probs_itemsize, bh))            # attn out
        # ~4 f32 score-sized temporaries (scores/exp/attn) + 1 bf16 copy, plus
        # bf16 casts of q/k/v and the f32 ctx accumulator.
        temps = (bh * _round_up(tq, 8) * _round_up(S, 128) * (4 * 4 + 2)
                 + bh * (_round_up(tq, 8) + 2 * _round_up(S, 8))
                     * _round_up(D, 128) * 2
                 + bh * _round_up(tq, 8) * _round_up(D, 128) * 4)
        return blocks + temps

    best = None
    for tq in q_cands:
        for bh in bh_cands:
            if footprint(bh, tq) <= vmem_budget:
                best = (bh, tq)
                break
        if best is not None:
            break
    if best is None:
        # Nothing fits (huge S): smallest combo, lean on vmem_limit_bytes.
        # TODO(synk): flash-style kv-tiled path removes this cliff entirely.
        best = (bh_cands[-1], q_cands[-1])
    bh, tq = best

    # Lane-dense ctx output only when the flattened block obeys the (8, 128)
    # tiling rules (sublane dim bh, lane dim tq*D).
    flatten_ctx = (D < 128
                   and (bh % 8 == 0 or bh == BH)
                   and ((tq * D) % 128 == 0 or tq == S))
    return bh, tq, flatten_ctx


def _key_pad_vector(attn_pad, B, S):
    """Reduce BERT's (broadcast) pad mask to a per-batch key vector (B, S)."""
    m = jnp.asarray(attn_pad)
    if m.ndim not in (2, 3, 4):
        raise ValueError(f"unsupported attn_pad rank: {m.ndim}")

    # Best-effort check (concrete masks only): the mask must be pure key
    # padding, i.e. identical across query rows (and heads) — otherwise we
    # would silently drop a causal / per-query mask.
    try:
        a = np.asarray(m)
    except Exception:
        a = None    # traced: cannot verify, documented assumption applies
    if a is not None:
        if a.ndim == 3 and not bool((a == a[:, :1, :]).all()):
            raise ValueError("attn_pad must be a key-padding mask (identical "
                             "across query rows); per-query masks unsupported.")
        if a.ndim == 4 and not bool((a == a[:, :1, :1, :]).all()):
            raise ValueError("attn_pad must be a key-padding mask (identical "
                             "across heads and query rows).")

    if m.ndim == 2:      # (B, S)
        v = m
    elif m.ndim == 3:    # (B, S_q, S_k) — get_attn_pad_mask output
        v = m[:, 0, :]
    else:                # (B, H, S_q, S_k) broadcast form
        v = m[:, 0, 0, :]
    return v.astype(jnp.bool_)


def scaled_dot_product_attention(Q, K, V, attn_pad, *,
                                 compute_dtype=jnp.bfloat16,
                                 probs_dtype=jnp.bfloat16):
    """Q, K, V: (B, H, S, D); attn_pad: key-padding mask (True = padded key).

    Returns (context (B, H, S, D) in Q.dtype, attn (B, H, S, S) in probs_dtype),
    matching the PyTorch module's forward.
    """
    B, H, S, D = Q.shape
    BH = B * H
    scale = 1.0 / math.sqrt(D)  # d_k == head dim

    q = Q.reshape(BH, S, D)
    k = K.reshape(BH, S, D)
    v = V.reshape(BH, S, D)

    # Additive key-pad bias: O(BH*S) instead of O(BH*S^2) mask traffic, and a
    # single add (vs cmp+select) inside the kernel.
    key_pad = _key_pad_vector(attn_pad, B, S)                       # (B, S)
    bias = jnp.where(key_pad, jnp.float32(-1000000000.0), jnp.float32(0.0))
    bias = jnp.broadcast_to(bias[:, None, :], (B, H, S)).reshape(BH, 1, S)

    vmem_limit = _vmem_limit_bytes()
    bh_tile, q_tile, flatten_ctx = _choose_tiles(
        BH, S, D,
        in_itemsize=jnp.dtype(Q.dtype).itemsize,
        probs_itemsize=jnp.dtype(probs_dtype).itemsize,
        vmem_budget=int(vmem_limit * 0.85))          # headroom for internals

    kernel = functools.partial(_sdpa_kernel, scale=scale,
                               compute_dtype=compute_dtype,
                               flatten_ctx=flatten_ctx)

    # q-tile axis trailing: K/V/bias index_maps are constant along it, so their
    # blocks stay resident across the q steps of one bh group.
    grid = (BH // bh_tile, S // q_tile)

    if flatten_ctx:
        ctx_out_shape = jax.ShapeDtypeStruct((BH, S * D), Q.dtype)
        ctx_spec = pl.BlockSpec((bh_tile, q_tile * D), lambda i, j: (i, j))
    else:
        ctx_out_shape = jax.ShapeDtypeStruct((BH, S, D), Q.dtype)
        ctx_spec = pl.BlockSpec((bh_tile, q_tile, D), lambda i, j: (i, j, 0))

    ctx, attn = pl.pallas_call(
        kernel,
        out_shape=(
            ctx_out_shape,
            jax.ShapeDtypeStruct((BH, S, S), probs_dtype),
        ),
        grid_spec=pltpu.PrefetchScalarGridSpec(
            num_scalar_prefetch=0,
            grid=grid,
            in_specs=[
                pl.BlockSpec((bh_tile, q_tile, D), lambda i, j: (i, j, 0)),
                pl.BlockSpec((bh_tile, S, D), lambda i, j: (i, 0, 0)),
                pl.BlockSpec((bh_tile, S, D), lambda i, j: (i, 0, 0)),
                pl.BlockSpec((bh_tile, 1, S), lambda i, j: (i, 0, 0)),
            ],
            out_specs=[
                ctx_spec,
                pl.BlockSpec((bh_tile, q_tile, S), lambda i, j: (i, j, 0)),
            ],
        ),
        compiler_params=pltpu.CompilerParams(
            dimension_semantics=("parallel", "parallel"),
            vmem_limit_bytes=int(vmem_limit)),
    )(q, k, v, bias)

    return ctx.reshape(B, H, S, D), attn.reshape(B, H, S, S)


def _reference(Q, K, V, attn_pad):
    D = Q.shape[-1]
    scores = jnp.einsum("bhqd,bhkd->bhqk", Q, K) / math.sqrt(D)
    scores = jnp.where(attn_pad, -1000000000.0, scores)
    attn = jax.nn.softmax(scores, axis=-1)
    ctx = jnp.einsum("bhqk,bhkd->bhqd", attn, V)
    return ctx, attn


if __name__ == "__main__":
    B, H, S, D = 2, 2, 8, 16  # small shapes; d_k = D = 16

    key = jax.random.PRNGKey(0)
    kq, kk, kv = jax.random.split(key, 3)
    Q = jax.random.normal(kq, (B, H, S, D), dtype=jnp.float32)
    K = jax.random.normal(kk, (B, H, S, D), dtype=jnp.float32)
    V = jax.random.normal(kv, (B, H, S, D), dtype=jnp.float32)

    # Deterministic key-padding mask: last 2 key positions of batch 1 are pad.
    pad_per_batch = jnp.array(
        [[False] * S, [False] * (S - 2) + [True] * 2], dtype=jnp.bool_
    )  # (B, S)
    attn_pad = jnp.broadcast_to(pad_per_batch[:, None, None, :], (B, H, S, S))

    ctx, attn = scaled_dot_product_attention(Q, K, V, attn_pad)
    jax.block_until_ready((ctx, attn))

    ref_ctx, ref_attn = _reference(Q, K, V, attn_pad)
    assert ctx.shape == (B, H, S, D) and attn.shape == (B, H, S, S)
    # bf16 MXU inputs + approx reciprocal + bf16 probs output => relaxed tol.
    assert jnp.allclose(ctx.astype(jnp.float32), ref_ctx, atol=5e-2, rtol=5e-2)
    assert jnp.allclose(attn.astype(jnp.float32), ref_attn, atol=5e-2, rtol=5e-2)

    print("KERNEL_OK")
</pallas_src>

<mosaic_0001>
module attributes {stable_mosaic.version = 11 : i64} {
  func.func @_sdpa_kernel(%arg0: i32, %arg1: i32, %arg2: memref<4x8x16xf32, #tpu.memory_space<vmem>>, %arg3: memref<4x8x16xf32, #tpu.memory_space<vmem>>, %arg4: memref<4x8x16xf32, #tpu.memory_space<vmem>>, %arg5: memref<4x1x8xf32, #tpu.memory_space<vmem>>, %arg6: memref<4x128xf32, #tpu.memory_space<vmem>>, %arg7: memref<4x8x8xbf16, #tpu.memory_space<vmem>>) attributes {dimension_semantics = [#tpu.dimension_semantics<parallel>, #tpu.dimension_semantics<parallel>], iteration_bounds = array<i64: 1, 1>, scalar_prefetch = 0 : i64, scratch_operands = 0 : i64, tpu.core_type = #tpu.core_type<tc>, window_params = [{transform_indices = @transform_0, window_bounds = array<i64: 4, 8, 16>}, {transform_indices = @transform_1, window_bounds = array<i64: 4, 8, 16>}, {transform_indices = @transform_2, window_bounds = array<i64: 4, 8, 16>}, {transform_indices = @transform_3, window_bounds = array<i64: 4, 1, 8>}, {transform_indices = @transform_4, window_bounds = array<i64: 4, 128>}, {transform_indices = @transform_5, window_bounds = array<i64: 4, 8, 8>}]} {
    %c0 = arith.constant 0 : index
    %c0_0 = arith.constant 0 : index
    %c0_1 = arith.constant 0 : index
    %0 = vector.load %arg2[%c0, %c0_0, %c0_1] : memref<4x8x16xf32, #tpu.memory_space<vmem>>, vector<4x8x16xf32>
    %cst = arith.constant 2.500000e-01 : f32
    %1 = vector.broadcast %cst : f32 to vector<4x8x16xf32>
    %2 = arith.mulf %0, %1 : vector<4x8x16xf32>
    %3 = arith.truncf %2 : vector<4x8x16xf32> to vector<4x8x16xbf16>
    %c0_2 = arith.constant 0 : index
    %c0_3 = arith.constant 0 : index
    %c0_4 = arith.constant 0 : index
    %4 = vector.load %arg3[%c0_2, %c0_3, %c0_4] : memref<4x8x16xf32, #tpu.memory_space<vmem>>, vector<4x8x16xf32>
    %5 = arith.truncf %4 : vector<4x8x16xf32> to vector<4x8x16xbf16>
    "tpu.trace_start"() <{level = 10 : i32, message = "bqd,bkd->bqk"}> : () -> ()
    %cst_5 = arith.constant dense<0.000000e+00> : vector<4x8x8xf32>
    %6 = tpu.matmul %3, %5, %cst_5 {dimension_numbers = #tpu.dot_dimension_numbers<[2], [2], [1], [1], [0, 0, 0, 1, 1, 1], [0], [0]>} : vector<4x8x16xbf16>, vector<4x8x16xbf16>, vector<4x8x8xf32> -> vector<4x8x8xf32>
    "tpu.trace_stop"() : () -> ()
    %c0_6 = arith.constant 0 : index
    %c0_7 = arith.constant 0 : index
    %c0_8 = arith.constant 0 : index
    %7 = vector.load %arg5[%c0_6, %c0_7, %c0_8] : memref<4x1x8xf32, #tpu.memory_space<vmem>>, vector<4x1x8xf32>
    %8 = vector.broadcast %7 : vector<4x1x8xf32> to vector<4x8x8xf32>
    %9 = arith.addf %6, %8 : vector<4x8x8xf32>
    %cst_9 = arith.constant dense<0xFF800000> : vector<4x8xf32>
    %10 = vector.multi_reduction <maximumf>, %9, %cst_9 [2] : vector<4x8x8xf32> to vector<4x8xf32>
    %11 = vector.shape_cast %10 : vector<4x8xf32> to vector<4x8x1xf32>
    %12 = vector.broadcast %11 : vector<4x8x1xf32> to vector<4x8x8xf32>
    %13 = arith.subf %9, %12 : vector<4x8x8xf32>
    %14 = math.exp %13 : vector<4x8x8xf32>
    %cst_10 = arith.constant dense<0.000000e+00> : vector<4x8xf32>
    %15 = vector.multi_reduction <add>, %14, %cst_10 [2] : vector<4x8x8xf32> to vector<4x8xf32>
    %16 = vector.shape_cast %15 : vector<4x8xf32> to vector<4x8x1xf32>
    %17 = tpu.reciprocal %16 {approx = true} : vector<4x8x1xf32> -> vector<4x8x1xf32>
    %18 = vector.broadcast %17 : vector<4x8x1xf32> to vector<4x8x8xf32>
    %19 = arith.mulf %14, %18 : vector<4x8x8xf32>
    %20 = arith.truncf %19 : vector<4x8x8xf32> to vector<4x8x8xbf16>
    %c0_11 = arith.constant 0 : index
    %c0_12 = arith.constant 0 : index
    %c0_13 = arith.constant 0 : index
    %21 = vector.load %arg7[%c0_11, %c0_12, %c0_13] : memref<4x8x8xbf16, #tpu.memory_space<vmem>>, vector<4x8x8xbf16>
    tpu.vector_store %arg7[%c0_11, %c0_12, %c0_13], %20 {strides = array<i32>} : memref<4x8x8xbf16, #tpu.memory_space<vmem>>, vector<4x8x8xbf16>,
    %c0_14 = arith.constant 0 : index
    %c0_15 = arith.constant 0 : index
    %c0_16 = arith.constant 0 : index
    %22 = vector.load %arg4[%c0_14, %c0_15, %c0_16] : memref<4x8x16xf32, #tpu.memory_space<vmem>>, vector<4x8x16xf32>
    %23 = arith.truncf %22 : vector<4x8x16xf32> to vector<4x8x16xbf16>
    "tpu.trace_start"() <{level = 10 : i32, message = "bqk,bkd->bqd"}> : () -> ()
    %cst_17 = arith.constant dense<0.000000e+00> : vector<4x8x16xf32>
    %24 = tpu.matmul %20, %23, %cst_17 {dimension_numbers = #tpu.dot_dimension_numbers<[2], [1], [1], [2], [0, 0, 0, 1, 1, 2], [0], [0]>} : vector<4x8x8xbf16>, vector<4x8x16xbf16>, vector<4x8x16xf32> -> vector<4x8x16xf32>
    "tpu.trace_stop"() : () -> ()
    %25 = vector.shape_cast %24 : vector<4x8x16xf32> to vector<4x128xf32>
    %c0_18 = arith.constant 0 : index
    %c0_19 = arith.constant 0 : index
    %26 = vector.load %arg6[%c0_18, %c0_19] : memref<4x128xf32, #tpu.memory_space<vmem>>, vector<4x128xf32>
    tpu.vector_store %arg6[%c0_18, %c0_19], %25 {strides = array<i32>} : memref<4x128xf32, #tpu.memory_space<vmem>>, vector<4x128xf32>,
    return
  }
  func.func @transform_0(%arg0: i32, %arg1: i32) -> (i32, i32, i32) {
    %c0_i32 = arith.constant 0 : i32
    %c0_i32_0 = arith.constant 0 : i32
    return %arg0, %arg1, %c0_i32 : i32, i32, i32
  }
  func.func @transform_1(%arg0: i32, %arg1: i32) -> (i32, i32, i32) {
    %c0_i32 = arith.constant 0 : i32
    %c0_i32_0 = arith.constant 0 : i32
    %c0_i32_1 = arith.constant 0 : i32
    return %arg0, %c0_i32, %c0_i32_0 : i32, i32, i32
  }
  func.func @transform_2(%arg0: i32, %arg1: i32) -> (i32, i32, i32) {
    %c0_i32 = arith.constant 0 : i32
    %c0_i32_0 = arith.constant 0 : i32
    %c0_i32_1 = arith.constant 0 : i32
    return %arg0, %c0_i32, %c0_i32_0 : i32, i32, i32
  }
  func.func @transform_3(%arg0: i32, %arg1: i32) -> (i32, i32, i32) {
    %c0_i32 = arith.constant 0 : i32
    %c0_i32_0 = arith.constant 0 : i32
    %c0_i32_1 = arith.constant 0 : i32
    return %arg0, %c0_i32, %c0_i32_0 : i32, i32, i32
  }
  func.func @transform_4(%arg0: i32, %arg1: i32) -> (i32, i32) {
    %c0_i32 = arith.constant 0 : i32
    return %arg0, %arg1 : i32, i32
  }
  func.func @transform_5(%arg0: i32, %arg1: i32) -> (i32, i32, i32) {
    %c0_i32 = arith.constant 0 : i32
    %c0_i32_0 = arith.constant 0 : i32
    return %arg0, %arg1, %c0_i32 : i32, i32, i32
  }
}

</mosaic_0001>

<bundles_post_ra>
// kernel: tpu_custom_call.1
= control target key start
LH: loop header
LB: loop body
LE: loop exit
PB: predicated region body
PF: predicated region fallthrough
CT: control target
= control target key end

     0   :  { %11 = vsyncpa [#allocation3], 0  ;;  %s1037_s0 = inlined_call_operand.hbm [shape: f32[4,8,16], index: 0, kind: input, shape index: {}]   ;;  %s1038_s1 = inlined_call_operand.hbm [shape: f32[4,8,16], index: 1, kind: input, shape index: {}]   ;;  %s1039_s2 = inlined_call_operand.hbm [shape: f32[4,8,16], index: 2, kind: input, shape index: {}]   ;;  %s1040_s3 = inlined_call_operand.vmem [shape: f32[4,1,8], index: 3, kind: input, shape index: {}]   ;;  %s1041_s4 = inlined_call_operand.hbm [shape: f32[4,128], index: 4, kind: output, shape index: {0}]   ;;  %s1042_s5 = inlined_call_operand.hbm [shape: bf16[4,8,8], index: 5, kind: output, shape index: {1}]  }
   0x1   :  { %12 = vsyncpa [#allocation6], 0 }
   0x2   :  { %13 = vsyncpa [#allocation4], 0 }
   0x3   :  { %14 = vsyncpa [#allocation10], 0  ;;  %s904_s18 = smov [#allocation5]   ;;  %s905_s20 = smov [#allocation2]  }
   0x4   :  { %s32_s19 = sshll.u32 %s904_s18, 4  ;;  %s20_s21 = sshll.u32 %s905_s20, 4  ;;  %s33_s19 = int_to_ptr.vmem [resolvable:$true] %s32_s19  ;;  %s21_s21 = int_to_ptr.vmem [resolvable:$true] %s20_s21 }
   0x5   :  { %s804_s22 = scalar_lea.vmem %s33_s19, 512  ;;  %p809_p1 = scmp.lt.s32.totalorder %s33_s19, %s33_s19 }
   0x6   :  { %p805_p0 = scmp.ne.s32.totalorder %s33_s19, %s804_s22  ;;  %p810_p2 = scmp.lt.s32.totalorder %s804_s22, %s804_s22 }
   0x8   :  { %p811_p3 = por %p810_p2, %p809_p1 }
   0xa   :  { %p812_p4 = pnand %p811_p3, %p805_p0 }
   0xc   :  { %815 = shalt.err (!%p812_p4)
}
   0xd   :  { %s906_s23 = smov 128   ;;  %s907_s24 = smov 8  }
   0xe   :  { %38 = dma.hbm_to_vmem [thread:$0]  %s1038_s1, 512, %s33_s19, [#allocation6], %s906_s23, %s906_s23, %s907_s24  }
   0xf   :  { %s824_s27 = scalar_lea.vmem %s21_s21, 512  ;;  %p829_p6 = scmp.lt.s32.totalorder %s21_s21, %s21_s21 }
  0x10   :  { %p825_p5 = scmp.ne.s32.totalorder %s21_s21, %s824_s27  ;;  %p830_p7 = scmp.lt.s32.totalorder %s824_s27, %s824_s27 }
  0x12   :  { %p831_p8 = por %p830_p7, %p829_p6 }
  0x14   :  { %p832_p9 = pnand %p831_p8, %p825_p5 }
  0x16   :  { %835 = shalt.err (!%p832_p9)
}
  0x17   :  { %26 = dma.hbm_to_vmem [thread:$0]  %s1037_s0, 512, %s21_s21, [#allocation3], %s906_s23, %s906_s23, %s907_s24  }
  0x18   :  { %s908_s30 = smov [#allocation7]  }
  0x19   :  { %s44_s6 = sshll.u32 %s908_s30, 4  ;;  %s45_s6 = int_to_ptr.vmem [resolvable:$true] %s44_s6 }
  0x1a   :  { %s844_s7 = scalar_lea.vmem %s45_s6, 512  ;;  %p849_p11 = scmp.lt.s32.totalorder %s45_s6, %s45_s6 }
  0x1b   :  { %p845_p10 = scmp.ne.s32.totalorder %s45_s6, %s844_s7  ;;  %p850_p12 = scmp.lt.s32.totalorder %s844_s7, %s844_s7 }
  0x1d   :  { %p851_p13 = por %p850_p12, %p849_p11 }
  0x1f   :  { %p852_p0 = pnand %p851_p13, %p845_p10 }
  0x21   :  { %855 = shalt.err (!%p852_p0)
}
  0x22   :  { %50 = dma.hbm_to_vmem [thread:$0]  %s1039_s2, 512, %s45_s6, [#allocation6], %s906_s23, %s906_s23, %s907_s24  }
  0x23   :  { %896 = dma.done.wait [#allocation3], 512  }
  0x24   :  { %897 = vsyncadd [#allocation3], 4294966784 }
  0x25   :  { %898 = dma.done.wait [#allocation6], 1024  }
  0x26   :  { %899 = vsyncadd [#allocation6], 4294966272  ;;  %v909_v0 = vmov 0.0   ;;  %vm910_vm0 = vmmov 0   ;;  %v75_v1 = vld [vmem:[#allocation5] sm:$0xff]  ;;  %vm111_vm1 = vcmask 130048  }
  0x27   :  { %713 = vmatprep.subr.bf16.mxu0 %v909_v0  ;;  %719 = vmatprep.subr.bf16.mxu1 %v909_v0  ;;  %v76_v2 = vld [vmem:[#allocation5 + $0x8] sm:$0xff]  ;;  %v63_v3 = vld [vmem:[#allocation2] sm:$0xff]  ;;  %v79_v4 = vpack.c.bf16 %v75_v1, %v75_v1  ;;  %v77_v7 = vld [vmem:[#allocation5 + $0x10] sm:$0xff]  ;;  %vm296_vm2 = vcmask 64512   ;;  %vm361_vm3 = vcmask 1043456   ;;  %vm345_vm4 = vcmask 60416  }
  0x28   :  { %715 = vmatprep.mubr.msk.bf16.mxu0 %vm910_vm0, %v909_v0  ;;  %721 = vmatprep.mubr.msk.bf16.mxu1 %vm910_vm0, %v909_v0  ;;  %v80_v5 = vpack.c.bf16 %v76_v2, %v76_v2  ;;  %v64_v6 = vld [vmem:[#allocation2 + $0x8] sm:$0xff]  ;;  %v78_v8 = vld [vmem:[#allocation5 + $0x18] sm:$0xff]  ;;  %v67_v11 = vmul.f32 0.25, %v63_v3  ;;  %v81_v13 = vpack.c.bf16 %v77_v7, %v77_v7  ;;  %v65_v17 = vld [vmem:[#allocation2 + $0x10] sm:$0xff]  ;;  %s914_s15 = smov [#allocation9]   ;;  %s915_s17 = smov 16  }
  0x29   :  { %v116_v9 = vsel %vm111_vm1, %v79_v4, 0  ;;  %v68_v12 = vmul.f32 0.25, %v64_v6  ;;  %v82_v14 = vpack.c.bf16 %v78_v8, %v78_v8  ;;  %v66_v18 = vld [vmem:[#allocation2 + $0x18] sm:$0xff]  ;;  %v69_v21 = vmul.f32 0.25, %v65_v17  ;;  %v685_v25 = vld [vmem:[%s1040_s3] ss:$0 sm:$0xff] }
  0x2a   :  { %v162_v10 = vsel %vm111_vm1, %v80_v5, 0  ;;  %714 = vmatpush3.bf16.xpose.msra.mxu0 %v116_v9  ;;  %v71_v15 = vpack.c.bf16 %v67_v11, %v67_v11  ;;  %v208_v19 = vsel %vm111_vm1, %v81_v13, 0  ;;  %v70_v22 = vmul.f32 0.25, %v66_v18  ;;  %v686_v26 = vld [vmem:[%s1040_s3 + $0x1] ss:$0 sm:$0xff]  ;;  %s668_s16 = sshll.u32 %s914_s15, 4  ;;  %s669_s16 = int_to_ptr.vmem [resolvable:$true] %s668_s16 }
  0x2b   :  { %720 = vmatpush3.bf16.xpose.msra.mxu1 %v162_v10  ;;  %725 = vmatprep.subr.bf16.mxu0 %v909_v0  ;;  %v72_v16 = vpack.c.bf16 %v68_v12, %v68_v12  ;;  %v254_v20 = vsel %vm111_vm1, %v82_v14, 0  ;;  %v73_v23 = vpack.c.bf16 %v69_v21, %v69_v21  ;;  %v688_v39 = vld [vmem:[%s1040_s3 + $0x3] ss:$0 sm:$0xff]  ;;  %v687_v40 = vld [vmem:[%s1040_s3 + $0x2] ss:$0 sm:$0xff]  ;;  %v351_v12 = vld [vmem:[#allocation7 + $0x8] sm:$0xff]  ;;  %p861_p2 = scmp.lt.s32.totalorder %s669_s16, %s669_s16 }
  0x2c   :  { %731 = vmatprep.subr.bf16.mxu1 %v909_v0  ;;  %v74_v24 = vpack.c.bf16 %v70_v22, %v70_v22  ;;  %v350_v10 = vld [vmem:[#allocation7] sm:$0xff]  ;;  %v355_v13 = vpack.c.bf16 %v351_v12, %v351_v12  ;;  %s913_s3 = smov 32   ;;  %s856_s18 = scalar_lea.vmem %s669_s16, 256 }
  0x2d   :  { %v354_v11 = vpack.c.bf16 %v350_v10, %v350_v10  ;;  %p857_p1 = scmp.ne.s32.totalorder %s669_s16, %s856_s18  ;;  %p862_p3 = scmp.lt.s32.totalorder %s856_s18, %s856_s18 }
  0x2f   :  { %v363_v14 = vsel %vm361_vm3, %v354_v11, 0  ;;  %p863_p4 = por %p862_p3, %p861_p2 }
  0x31   :  { %716 = vmatmul.mubr.msk.bf16.vlgmr.msra.gmra.mxu0 %vm111_vm1, %v71_v15  ;;  %v409_v15 = vsel %vm361_vm3, %v355_v13, 0  ;;  %p864_p5 = pnand %p863_p4, %p857_p1 }
  0x32   :  { %722 = vmatmul.mubr.msk.bf16.vlgmr.msra.gmra.mxu1 %vm111_vm1, %v72_v16  ;;  %726 = vmatpush3.bf16.xpose.msra.mxu0 %v208_v19  ;;  %v352_v19 = vld [vmem:[#allocation7 + $0x10] sm:$0xff] }
  0x33   :  { %732 = vmatpush3.bf16.xpose.msra.mxu1 %v254_v20  ;;  %727 = vmatprep.mubr.msk.bf16.mxu0 %vm910_vm0, %v909_v0  ;;  %v356_v21 = vpack.c.bf16 %v352_v19, %v352_v19 }
  0x34   :  { %733 = vmatprep.mubr.msk.bf16.mxu1 %vm910_vm0, %v909_v0  ;;  %737 = vmatprep.subr.bf16.mxu0 %v909_v0 }
  0x35   :  { %743 = vmatprep.subr.bf16.mxu1 %v909_v0 }
  0x39   :  { %728 = vmatmul.mubr.msk.bf16.vlgmr.msra.gmra.mxu0 %vm111_vm1, %v73_v23  ;;  %v353_v23 = vld [vmem:[#allocation7 + $0x18] sm:$0xff] }
  0x3a   :  { %734 = vmatmul.mubr.msk.bf16.vlgmr.msra.gmra.mxu1 %vm111_vm1, %v74_v24  ;;  %739 = vmatprep.mubr.msk.bf16.mxu0 %vm910_vm0, %v909_v0 }
  0x3b   :  { %745 = vmatprep.mubr.msk.bf16.mxu1 %vm910_vm0, %v909_v0  ;;  %738 = vmatpush3.bf16.msra.mxu0 %v363_v14 }
  0x3c   :  { %744 = vmatpush3.bf16.msra.mxu1 %v409_v15  ;;  %749 = vmatprep.subr.bf16.mxu0 %v909_v0 }
  0x3d   :  { %755 = vmatprep.subr.bf16.mxu1 %v909_v0 }
  0xf1   :  { %v152_v27 = vpop.f32.mrf.mxu0 }
  0xf2   :  { %v198_v28 = vpop.f32.mrf.mxu1  ;;  %v153_v29 = vadd.f32 %v685_v25, %v152_v27  ;;  %v357_v27 = vpack.c.bf16 %v353_v23, %v353_v23 }
  0xf3   :  { %v199_v30 = vadd.f32 %v686_v26, %v198_v28  ;;  %v717_v31 = vpop.f32.mrf.mxu0  ;;  %v455_v26 = vsel %vm361_vm3, %v356_v21, 0 }
  0xf4   :  { %v723_v32 = vpop.f32.mrf.mxu1  ;;  %v297_v33 = vsel %vm296_vm2, %v153_v29, -inf  ;;  %v501_v31 = vsel %vm361_vm3, %v357_v27, 0 }
  0xf5   :  { %298 = vmax.xlane.f32.xlu0 %v297_v33  ;;  %v155_v35 = vpop.f32.mrf.mxu0  ;;  %v300_v36 = vsel %vm296_vm2, %v199_v30, -inf }
  0xf6   :  { %v201_v34 = vpop.f32.mrf.mxu1 }
  0xf7   :  { %v718_v37 = vpop.f32.mrf.mxu0 }
  0xf8   :  { %v724_v38 = vpop.f32.mrf.mxu1 }
  0xf9   :  { %301 = vmax.xlane.f32.xlu0 %v300_v36  ;;  %v244_v42 = vpop.f32.mrf.mxu0 }
  0xfa   :  { %v290_v41 = vpop.f32.mrf.mxu1  ;;  %v245_v44 = vadd.f32 %v687_v40, %v244_v42  ;;  %v911_v40 = vmov 1983009808   ;;  %v548_v42 = vlaneseq }
  0xfb   :  { %v291_v43 = vadd.f32 %v688_v39, %v290_v41  ;;  %v729_v45 = vpop.f32.mrf.mxu0  ;;  %v546_v41 = vunpack.c.l.s4 %v911_v40 }
  0xfc   :  { %v735_v46 = vpop.f32.mrf.mxu1  ;;  %v303_v47 = vsel %vm296_vm2, %v245_v44, -inf }
  0xfd   :  { %304 = vmax.xlane.f32.xlu1 %v303_v47  ;;  %v247_v49 = vpop.f32.mrf.mxu0  ;;  %v306_v50 = vsel %vm296_vm2, %v291_v43, -inf  ;;  %v912_v47 = vmov 1934713408  }
  0xfe   :  { %v293_v48 = vpop.f32.mrf.mxu1  ;;  %v547_v49 = vunpack.c.0.s8 %v546_v41 }
  0xff   :  { %v730_v51 = vpop.f32.mrf.mxu0  ;;  %v578_v48 = vunpack.c.l.s4 %v912_v47 }
 0x100   :  { %v736_v52 = vpop.f32.mrf.mxu1 }
 0x101   :  { %307 = vmax.xlane.f32.xlu1 %v306_v50  ;;  %v549_v50 = vshrl.u32 %v548_v42, 7 }
 0x17e   :  { %v299_v53 = vpop.xlane.xlu0 %298 }
 0x17f   :  { %v309_v54 = vsub.f32 %v153_v29, %v299_v53 }
 0x181   :  { %v313_v55 = vmul.f32 1.442695, %v309_v54 }
 0x182   :  { %v302_v56 = vpop.xlane.xlu0 %301 }
 0x183   :  { %780 = vpow2.f32 %v313_v55  ;;  %v310_v57 = vsub.f32 %v199_v30, %v302_v56  ;;  %v579_v55 = vunpack.c.0.s8 %v578_v48 }
 0x185   :  { %v315_v58 = vmul.f32 1.442695, %v310_v57 }
 0x186   :  { %v305_v59 = vpop.xlane.xlu1 %304 }
 0x187   :  { %782 = vpow2.f32 %v315_v58  ;;  %v311_v60 = vsub.f32 %v245_v44, %v305_v59  ;;  %v550_v58 = vsub.s32 %v547_v49, %v549_v50 }
 0x189   :  { %v317_v61 = vmul.f32 1.442695, %v311_v60 }
 0x18a   :  { %v308_v62 = vpop.xlane.xlu1 %307 }
 0x18b   :  { %784 = vpow2.f32 %v317_v61  ;;  %v312_v63 = vsub.f32 %v291_v43, %v308_v62 }
 0x18d   :  { %v319_v1 = vmul.f32 1.442695, %v312_v63 }
 0x18f   :  { %786 = vpow2.f32 %v319_v1 }
 0x190   :  { %v781_v2 = vpop.eup %780 }
 0x191   :  { %v321_v3 = vsel %vm296_vm2, %v781_v2, 0.0 }
 0x192   :  { %322 = vadd.xlane.f32.xlu0 %v321_v3 }
 0x194   :  { %v783_v4 = vpop.eup %782 }
 0x195   :  { %v324_v5 = vsel %vm296_vm2, %v783_v4, 0.0 }
 0x196   :  { %325 = vadd.xlane.f32.xlu1 %v324_v5 }
 0x198   :  { %v785_v6 = vpop.eup %784 }
 0x199   :  { %v327_v7 = vsel %vm296_vm2, %v785_v6, 0.0 }
 0x19a   :  { %328 = vadd.xlane.f32.xlu0 %v327_v7 }
 0x19c   :  { %v787_v8 = vpop.eup %786 }
 0x19d   :  { %v330_v9 = vsel %vm296_vm2, %v787_v8, 0.0 }
 0x19e   :  { %331 = vadd.xlane.f32.xlu1 %v330_v9 }
 0x21b   :  { %v323_v16 = vpop.xlane.xlu0 %322 }
 0x21c   :  { %788 = vrcp.f32 %v323_v16 }
 0x21f   :  { %v326_v17 = vpop.xlane.xlu1 %325 }
 0x220   :  { %790 = vrcp.f32 %v326_v17 }
 0x223   :  { %v329_v18 = vpop.xlane.xlu0 %328 }
 0x224   :  { %792 = vrcp.f32 %v329_v18 }
 0x227   :  { %v332_v20 = vpop.xlane.xlu1 %331 }
 0x228   :  { %794 = vrcp.f32 %v332_v20 }
 0x229   :  { %v789_v22 = vpop.eup %788 }
 0x22a   :  { %v337_v24 = vmul.f32 %v789_v22, %v781_v2  ;;  %v582_v2 = vsub.s32 %v579_v55, %v549_v50 }
 0x22c   :  { %v341_v25 = vpack.c.bf16 %v337_v24, %v337_v24 }
 0x22d   :  { %v791_v28 = vpop.eup %790 }
 0x22e   :  { %740 = vmatmul.mubr.msk.bf16.vlgmr.msra.gmra.mxu0 %vm296_vm2, %v341_v25  ;;  %v338_v29 = vmul.f32 %v791_v28, %v783_v4  ;;  %346 = vst.msk [vmem:[#allocation9] sm:$0xf] %vm345_vm4, %v341_v25 }
 0x22f   :  { %750 = vmatpush3.bf16.msra.mxu0 %v455_v26  ;;  %751 = vmatprep.mubr.msk.bf16.mxu0 %vm910_vm0, %v909_v0 }
 0x230   :  { %v342_v30 = vpack.c.bf16 %v338_v29, %v338_v29 }
 0x231   :  { %v793_v32 = vpop.eup %792 }
 0x232   :  { %746 = vmatmul.mubr.msk.bf16.vlgmr.msra.gmra.mxu1 %vm296_vm2, %v342_v30  ;;  %v339_v33 = vmul.f32 %v793_v32, %v785_v6  ;;  %347 = vst.msk [vmem:[#allocation9 + $0x4] sm:$0xf] %vm345_vm4, %v342_v30 }
 0x233   :  { %756 = vmatpush3.bf16.msra.mxu1 %v501_v31  ;;  %757 = vmatprep.mubr.msk.bf16.mxu1 %vm910_vm0, %v909_v0 }
 0x234   :  { %v343_v34 = vpack.c.bf16 %v339_v33, %v339_v33 }
 0x235   :  { %v795_v35 = vpop.eup %794 }
 0x236   :  { %752 = vmatmul.mubr.msk.bf16.vlgmr.msra.gmra.mxu0 %vm296_vm2, %v343_v34  ;;  %v340_v36 = vmul.f32 %v795_v35, %v787_v8  ;;  %348 = vst.msk [vmem:[#allocation9 + $0x8] sm:$0xf] %vm345_vm4, %v343_v34 }
 0x238   :  { %v344_v37 = vpack.c.bf16 %v340_v36, %v340_v36 }
 0x23a   :  { %758 = vmatmul.mubr.msk.bf16.vlgmr.msra.gmra.mxu1 %vm296_vm2, %v344_v37  ;;  %349 = vst.msk [vmem:[#allocation9 + $0xc] sm:$0xf] %vm345_vm4, %v344_v37 }
 0x2ee   :  { %v399_v38 = vpop.f32.mrf.mxu0 }
 0x2f0   :  { %v741_v39 = vpop.f32.mrf.mxu0 }
 0x2f2   :  { %v402_v43 = vpop.f32.mrf.mxu0  ;;  %v445_v44 = vpop.f32.mrf.mxu1 }
 0x2f4   :  { %v742_v45 = vpop.f32.mrf.mxu0  ;;  %v747_v46 = vpop.f32.mrf.mxu1 }
 0x2f6   :  { %v448_v51 = vpop.f32.mrf.mxu1  ;;  %v491_v52 = vpop.f32.mrf.mxu0 }
 0x2f7   :  { %v543_v56 = vcombine.low %v399_v38, %v491_v52  ;;  %v544_v57 = vcombine.high %v399_v38, %v491_v52 }
 0x2f8   :  { %v748_v53 = vpop.f32.mrf.mxu1  ;;  %v753_v54 = vpop.f32.mrf.mxu0 }
 0x2f9   :  { %v551_v3 = vrot.slane %v543_v56, %v550_v58  ;;  %v558_v4 = vrot.slane %v544_v57, %v550_v58 }
 0x2fa   :  { %v494_v59 = vpop.f32.mrf.mxu0  ;;  %v537_v60 = vpop.f32.mrf.mxu1 }
 0x2fb   :  { %v559_v61 = vcombine.low %v445_v44, %v537_v60  ;;  %v560_v62 = vcombine.high %v445_v44, %v537_v60 }
 0x2fc   :  { %v754_v63 = vpop.f32.mrf.mxu0  ;;  %v759_v1 = vpop.f32.mrf.mxu1 }
 0x2fd   :  { %v567_v5 = vrot.slane %v559_v61, %v550_v58  ;;  %v574_v6 = vrot.slane %v560_v62, %v550_v58 }
 0x2fe   :  { %v540_v7 = vpop.f32.mrf.mxu1 }
 0x2ff   :  { %v575_v8 = vcombine.low %v551_v3, %v567_v5  ;;  %v576_v9 = vcombine.high %v551_v3, %v567_v5  ;;  %v591_v10 = vcombine.low %v558_v4, %v574_v6  ;;  %v592_v14 = vcombine.high %v558_v4, %v574_v6 }
 0x300   :  { %v760_v11 = vpop.f32.mrf.mxu1 }
 0x301   :  { %v590_v12 = vrot.slane %v576_v9, %v582_v2  ;;  %v583_v13 = vrot.slane %v575_v8, %v582_v2  ;;  %v599_v16 = vrot.slane %v591_v10, %v582_v2 }
 0x303   :  { %616 = vrot.lane.b32.xlu1 %v590_v12, %s913_s3  ;;  %v607_v15 = vcombine.high %v583_v13, %v909_v0 }
 0x305   :  { %612 = vrot.lane.b32.xlu0 %v607_v15, %s915_s17 }
 0x306   :  { %867 = shalt.err (!%p864_p5)
}
 0x307   :  { %s916_s19 = smov 64   ;;  %s917_s20 = smov 4   ;;  %v609_v17 = vcombine.high %v599_v16, %v909_v0  ;;  %v606_v18 = vrot.slane %v592_v14, %v582_v2  ;;  %v608_v19 = vcombine.high %v590_v12, %v909_v0  ;;  %vm640_vm5 = vcmask 261120  }
 0x308   :  { %674 = dma.vmem_to_hbm [thread:$0]  %s669_s16, 256, %s1042_s5, [#allocation10], %s916_s19, %s916_s19, %s917_s20   ;;  %vm642_vm6 = vcmask 392192   ;;  %vm644_vm7 = vcmask 523264   ;;  %vm646_vm8 = vcmask 654336   ;;  %vm648_vm9 = vcmask 785408  }
 0x309   :  { %624 = vrot.lane.b32.xlu1 %v599_v16, %s916_s19  ;;  %s918_s23 = smov 80   ;;  %s919_s24 = smov 48   ;;  %v610_v20 = vcombine.high %v606_v18, %v909_v0  ;;  %vm650_vm10 = vcmask 916480  }
 0x30a   :  { %628 = vrot.lane.b32.xlu0 %v609_v17, %s918_s23  ;;  %s920_s25 = smov 112   ;;  %s921_s26 = smov 96  }
 0x30b   :  { %s922_s5 = smov [#allocation8]  }
 0x30c   :  { %s659_s27 = sshll.u32 %s922_s5, 4  ;;  %s660_s27 = int_to_ptr.vmem [resolvable:$true] %s659_s27 }
 0x30d   :  { %620 = vrot.lane.b32.xlu1 %v608_v19, %s919_s24  ;;  %s876_s28 = scalar_lea.vmem %s660_s27, 64  ;;  %p881_p7 = scmp.lt.s32.totalorder %s660_s27, %s660_s27 }
 0x30e   :  { %636 = vrot.lane.b32.xlu0 %v610_v20, %s920_s25  ;;  %p877_p6 = scmp.ne.s32.totalorder %s660_s27, %s876_s28  ;;  %p882_p8 = scmp.lt.s32.totalorder %s876_s28, %s876_s28 }
 0x310   :  { %p883_p9 = por %p882_p8, %p881_p7 }
 0x311   :  { %632 = vrot.lane.b32.xlu1 %v606_v18, %s921_s26 }
 0x312   :  { %p884_p10 = pnand %p883_p9, %p877_p6 }
 0x375   :  { %v617_v21 = vpop.permute.xlu1 %616 }
 0x377   :  { %v613_v22 = vpop.permute.xlu0 %612 }
 0x378   :  { %v639_v24 = vsel %vm111_vm1, %v583_v13, %v613_v22 }
 0x379   :  { %v641_v27 = vsel %vm640_vm5, %v639_v24, %v617_v21 }
 0x37b   :  { %v625_v23 = vpop.permute.xlu1 %624 }
 0x37c   :  { %v629_v25 = vpop.permute.xlu0 %628 }
 0x37f   :  { %v621_v26 = vpop.permute.xlu1 %620 }
 0x380   :  { %v643_v28 = vsel %vm642_vm6, %v641_v27, %v621_v26  ;;  %v637_v31 = vpop.permute.xlu0 %636 }
 0x381   :  { %v645_v29 = vsel %vm644_vm7, %v643_v28, %v625_v23 }
 0x382   :  { %v647_v0 = vsel %vm646_vm8, %v645_v29, %v629_v25 }
 0x383   :  { %v633_v30 = vpop.permute.xlu1 %632 }
 0x384   :  { %v649_v32 = vsel %vm648_vm9, %v647_v0, %v633_v30 }
 0x385   :  { %v651_v33 = vsel %vm650_vm10, %v649_v32, %v637_v31 }
 0x386   :  { %652 = vst [vmem:[#allocation8] sm:$0xf] %v651_v33 }
 0x387   :  { %887 = shalt.err (!%p884_p10)
}
 0x388   :  { %662 = dma.vmem_to_hbm [thread:$0]  %s660_s27, 64, %s1041_s4, [#allocation4]  }
 0x389   :  { %900 = dma.done.wait [#allocation4], 64  }
 0x38a   :  { %901 = vsyncadd [#allocation4], 4294967232 }
 0x38b   :  { %902 = dma.done.wait [#allocation10], 256  }
 0x38c   :  { %903 = vsyncadd [#allocation10], 4294967040 }
 0x38d   :  { %681 = vsyncpa [#allocation3], 1 }
 0x38e   :  { %682 = vsyncpa [#allocation6], 1 }
 0x38f   :  { %683 = vsyncpa [#allocation4], 1 }
 0x390   :  { %684 = vsyncpa [#allocation10], 1 }

</bundles_post_ra>
